<compile_context>
chip_gen: v7x
topology: tpu7x:2x2x1
jax: 0.10.0
libtpu: 0.0.40
codegen_flags: <defaults>
</compile_context>

<pallas_src>
import functools

import jax
import jax.numpy as jnp
from jax.experimental import pallas as pl
from jax.experimental.pallas import tpu as pltpu


def _round_up(v, m):
    return (v + m - 1) // m * m


def _pack_layout(cin_p, h_p):
    """Row offsets of the packed small-parameter buffer (shared wrapper/kernel)."""
    r_b1 = 2 * cin_p          # rows [0, r_b1)          : fused conv1 weight [Wl1; Wr1]
    r_w2f = r_b1 + 8          # rows [r_b1, r_b1+1)     : conv1 bias (8-row aligned slot)
    r_bp = r_w2f + h_p        # rows [r_w2f, r_w2f+h_p) : conv2 projections [wl2 | wr2]
    rows = r_bp + 8           # rows [r_bp, r_bp+1)     : [0, b2] folded conv2 bias
    return r_b1, r_w2f, r_bp, rows


def _sage_stage1_kernel(a_ref, x_ref, pp_ref, p_ref, z_ref, *, n_valid):
    """Per row-tile: h1 = relu([A@X | X] @ W1f + b1); emit lane-dense [q | r] = h1 @ [wl2|wr2] (+b2)."""
    i = pl.program_id(0)
    tm = a_ref.shape[0]
    cin_p = x_ref.shape[1]
    h_p = pp_ref.shape[1]
    r_b1, r_w2f, r_bp, _ = _pack_layout(cin_p, h_p)
    f32 = jnp.float32

    row0 = pl.multiple_of(i * tm, 128)

    # ---- SAGEConv 1 mean aggregation on the MXU (bf16 operands, f32 accumulate) ----
    agg = jnp.dot(a_ref[...], x_ref[...], preferred_element_type=f32)       # (TM, Cin_p)

    # Stage [agg | x_root] into a persistent VMEM scratch (aligned 128-lane stores)
    # instead of a lane concatenate, then one fused K=2*Cin_p matmul against [Wl1; Wr1].
    z_ref[:, 0:cin_p] = agg.astype(z_ref.dtype)
    z_ref[:, cin_p:2 * cin_p] = x_ref[pl.ds(row0, tm), :]

    w1f = pp_ref[0:r_b1, :]                                                 # (2*Cin_p, H_p)
    b1 = pp_ref[r_b1:r_b1 + 1, :]                                           # (1, H_p)
    h1 = jnp.maximum(
        jnp.dot(z_ref[...], w1f, preferred_element_type=f32) + b1.astype(f32),
        0.0)                                                                # (TM, H_p)
    # dropout (eval mode) -> identity

    # ---- layer-2 per-node projections: col 0 = q = h1@wl2, col 1 = r = h1@wr2 + b2 ----
    w2f = pp_ref[r_w2f:r_w2f + h_p, :]                                      # (H_p, H_p)
    bp = pp_ref[r_bp:r_bp + 1, :]                                           # (1, H_p)
    p_full = (jnp.dot(h1.astype(w2f.dtype), w2f, preferred_element_type=f32)
              + bp.astype(f32))                                             # (TM, H_p)

    # Mask padded rows (i >= N): bias broadcast would otherwise make them nonzero,
    # and downstream correctness should not depend on zero-padded fc1 weights.
    rows_idx = jax.lax.broadcasted_iota(jnp.int32, (tm, 1), 0) + i * tm
    p_out = jnp.where(rows_idx < n_valid, p_full[:, 0:128], 0.0)            # (TM, 128)
    p_ref[...] = p_out.astype(p_ref.dtype)


def _sage_stage2_kernel(a_ref, p_ref, wfc1_ref, out_ref, *, tiles_per_core):
    """h2 = relu(A @ q + r); accumulate the fc1 node-axis contraction per core."""
    c = pl.program_id(0)          # TensorCore split (v7x megacore), "parallel"
    i = pl.program_id(1)          # row tiles within a core, "arbitrary" (accumulated)
    tm = a_ref.shape[0]
    f32 = jnp.float32

    @pl.when(i == 0)
    def _init():
        out_ref[...] = jnp.zeros_like(out_ref)

    # A @ [q | r | 0...]  (only lane 0 — the aggregated q — is consumed below).
    ap = jnp.dot(a_ref[...], p_ref[...], preferred_element_type=f32)        # (TM, 128)
    row0 = pl.multiple_of((c * tiles_per_core + i) * tm, 128)
    p_t = p_ref[pl.ds(row0, tm), :]                                         # (TM, 128)
    h2 = jnp.maximum(ap[:, 0:1] + p_t[:, 1:2].astype(f32), 0.0)             # (TM, 1)
    # dropout (eval mode) -> identity

    # fc1 partial: contract the node axis on the MXU; broadcast-add into the
    # 8-row per-core accumulator block (lane-dense, sublane-aligned output).
    contrib = jax.lax.dot_general(
        h2.astype(wfc1_ref.dtype), wfc1_ref[...],
        dimension_numbers=(((0,), (0,)), ((), ())),
        preferred_element_type=f32)                                         # (1, HOUT_p)
    out_ref[...] += contrib


def _vmem_capacity_bytes():
    try:
        return int(pltpu.get_tpu_info().vmem_capacity_bytes)
    except Exception:
        return 64 * 1024 * 1024   # conservative (v7x-sized) fallback


def _plan_tiles(n, cin_p, h_p, hout_p, rows, dt_bytes):
    """Pick the largest row tile whose full (double-buffered) footprint fits VMEM."""
    vmem_cap = _vmem_capacity_bytes()
    vmem_target = min(vmem_cap * 3 // 4, 96 * 1024 * 1024)   # ~48 MiB v7x, ~96 MiB v5e/v6e
    margin = 4 * 1024 * 1024

    def need(tm, n_pad):
        pass1 = (2 * tm * n_pad * dt_bytes        # streamed A tile (double buffered)
                 + 2 * n_pad * cin_p * dt_bytes   # resident X (counted at 2 buffers)
                 + 2 * rows * h_p * dt_bytes      # resident packed params
                 + 2 * tm * 128 * dt_bytes        # p output tile
                 + tm * 2 * cin_p * dt_bytes)     # z staging scratch
        pass2 = (2 * tm * n_pad * dt_bytes        # streamed A tile
                 + 2 * n_pad * 128 * dt_bytes     # resident p
                 + 2 * tm * hout_p * dt_bytes     # streamed fc1 weight rows
                 + 2 * 8 * hout_p * 4)            # f32 per-core partial accumulators
        return max(pass1, pass2)

    tm_cap = max(128, min(2048, _round_up(n, 128)))
    best = None
    for cand in range(tm_cap, 127, -128):
        n_pad_c = _round_up(n, 2 * cand)          # even tile count (2-core split)
        if need(cand, n_pad_c) + margin <= vmem_target:
            key = (n_pad_c, -cand)                # minimize padding, then maximize tile
            if best is None or key < best[0]:
                best = (key, cand, n_pad_c)
    if best is None:
        tm, n_pad = 128, _round_up(n, 256)        # TODO(synk): column-tile A for huge N
    else:
        tm, n_pad = best[1], best[2]
    vmem_limit = int(min(max(vmem_target, need(tm, n_pad) + margin), vmem_cap))
    return tm, n_pad, vmem_limit


def extract_middle_forward(A, x, params):
    n, cin = x.shape
    h1 = params["wl1"].shape[1]
    hout = params["wfc1"].shape[1]
    f32, bf16 = jnp.float32, jnp.bfloat16

    # ---- padded / tiled dimensions (lane-dense 128-wide layouts) ----
    cin_p = _round_up(cin, 128)
    h_p = _round_up(h1, 128)
    hout_p = _round_up(hout, 128)
    r_b1, r_w2f, r_bp, rows = _pack_layout(cin_p, h_p)

    tm, n_pad, vmem_limit = _plan_tiles(n, cin_p, h_p, hout_p, rows, 2)   # bf16 streams
    n_tiles = n_pad // tm
    tpc = n_tiles // 2            # row tiles per core in pass 2 (n_pad is a 2*tm multiple)

    # ---- wrapper-side layout plumbing: pad, fuse, pack, cast to bf16 ----
    a_pad = jnp.zeros((n_pad, n_pad), bf16).at[:n, :n].set(A.astype(bf16))
    x_pad = jnp.zeros((n_pad, cin_p), bf16).at[:n, :cin].set(x.astype(bf16))

    pp = jnp.zeros((rows, h_p), bf16)
    # fused conv1 weight: rows [0, cin) act on aggregated features, [cin_p, cin_p+cin) on root
    pp = pp.at[:cin, :h1].set(params["wl1"].astype(bf16))
    pp = pp.at[cin_p:cin_p + cin, :h1].set(params["wr1"].astype(bf16))
    pp = pp.at[r_b1, :h1].set(params["b1"].reshape(h1).astype(bf16))
    # conv2 projections packed as columns [q | r]; conv2 bias folded into the r column
    pp = pp.at[r_w2f:r_w2f + h1, 0].set(params["wl2"].reshape(h1).astype(bf16))
    pp = pp.at[r_w2f:r_w2f + h1, 1].set(params["wr2"].reshape(h1).astype(bf16))
    pp = pp.at[r_bp, 1].set(params["b2"].reshape(()).astype(bf16))

    wfc1 = jnp.zeros((n_pad, hout_p), bf16).at[:n, :hout].set(params["wfc1"].astype(bf16))

    # ---- pass 1: per-node h1 (fused Wl/Wr matmul) and lane-dense [q | r] ----
    stage1 = functools.partial(_sage_stage1_kernel, n_valid=n)
    p = pl.pallas_call(
        stage1,
        out_shape=jax.ShapeDtypeStruct((n_pad, 128), bf16),
        grid=(n_tiles,),
        in_specs=[
            pl.BlockSpec((tm, n_pad), lambda i: (i, 0)),      # A row tile (streamed)
            pl.BlockSpec((n_pad, cin_p), lambda i: (0, 0)),   # X (resident)
            pl.BlockSpec((rows, h_p), lambda i: (0, 0)),      # packed params (resident)
        ],
        out_specs=pl.BlockSpec((tm, 128), lambda i: (i, 0)),
        scratch_shapes=[pltpu.VMEM((tm, 2 * cin_p), bf16)],   # [agg | x_root] staging
        compiler_params=pltpu.CompilerParams(
            dimension_semantics=("parallel",),                # independent tiles (megacore)
            vmem_limit_bytes=vmem_limit),
    )(a_pad, x_pad, pp)

    # ---- pass 2: h2 = relu(A @ q + r); fc1 contraction, split across 2 cores ----
    stage2 = functools.partial(_sage_stage2_kernel, tiles_per_core=tpc)
    partial_out = pl.pallas_call(
        stage2,
        out_shape=jax.ShapeDtypeStruct((2 * 8, hout_p), f32),
        grid=(2, tpc),
        in_specs=[
            pl.BlockSpec((tm, n_pad), lambda c, i: (c * tpc + i, 0)),   # A row tile
            pl.BlockSpec((n_pad, 128), lambda c, i: (0, 0)),            # [q | r] (resident)
            pl.BlockSpec((tm, hout_p), lambda c, i: (c * tpc + i, 0)),  # fc1 weight rows
        ],
        out_specs=pl.BlockSpec((8, hout_p), lambda c, i: (c, 0)),
        compiler_params=pltpu.CompilerParams(
            dimension_semantics=("parallel", "arbitrary"),    # core split x accumulation
            vmem_limit_bytes=vmem_limit),
    )(a_pad, p, wfc1)

    # Combine the two per-core partials and add the fc1 bias in f32 on the host.
    vec = partial_out[0, :hout] + partial_out[8, :hout]
    return vec + params["bfc1"].reshape(-1).astype(f32)       # (last_layer_hidden,)


def build_normalized_adjacency(edge_index, num_nodes):
    """Dense row-normalized adjacency: A[i, j] = multiplicity(j->i) / in_degree(i)."""
    src, dst = edge_index[0], edge_index[1]
    A = jnp.zeros((num_nodes, num_nodes), jnp.float32).at[dst, src].add(1.0)
    deg = A.sum(axis=1, keepdims=True)
    return jnp.where(deg > 0, A / jnp.maximum(deg, 1.0), 0.0)


def reference_forward(A, x, params):
    """Plain-JAX reference mirroring the PyTorch module (eval mode, f32 HIGHEST)."""
    hp = jax.lax.Precision.HIGHEST
    agg1 = jnp.dot(A, x, precision=hp)
    h1 = jax.nn.relu(jnp.dot(agg1, params["wl1"], precision=hp)
                     + jnp.dot(x, params["wr1"], precision=hp)
                     + params["b1"])
    agg2 = jnp.dot(A, h1, precision=hp)
    h2 = jax.nn.relu(jnp.dot(agg2, params["wl2"], precision=hp)
                     + jnp.dot(h1, params["wr2"], precision=hp)
                     + params["b2"])
    return jnp.dot(h2[:, 0], params["wfc1"], precision=hp) + params["bfc1"][0]


if __name__ == "__main__":
    # Small, deterministic problem sizes.
    N = 8                 # number of graph nodes (fc1's lazy in_features binds to N)
    E = 16                # number of directed edges
    IN_CH = 4             # in_channels
    H1 = 32               # gnn_layer_hidden
    H_OUT = 16            # last_layer_hidden

    key = jax.random.PRNGKey(0)
    keys = jax.random.split(key, 10)

    # Node features and edge_index (shape [2, E], PyG convention: row0=src, row1=dst).
    x = jax.random.normal(keys[0], (N, IN_CH), jnp.float32)
    edge_index = jax.random.randint(keys[1], (2, E), 0, N, dtype=jnp.int32)
    A = build_normalized_adjacency(edge_index, N)

    # Deterministic synthetic parameters (stored as (in, out) so kernel does X @ W).
    scale = 0.1
    params = {
        "wl1":  scale * jax.random.normal(keys[2], (IN_CH, H1), jnp.float32),
        "wr1":  scale * jax.random.normal(keys[3], (IN_CH, H1), jnp.float32),
        "b1":   scale * jax.random.normal(keys[4], (1, H1), jnp.float32),
        "wl2":  scale * jax.random.normal(keys[5], (H1, 1), jnp.float32),
        "wr2":  scale * jax.random.normal(keys[6], (H1, 1), jnp.float32),
        "b2":   scale * jax.random.normal(keys[7], (1, 1), jnp.float32),
        "wfc1": scale * jax.random.normal(keys[8], (N, H_OUT), jnp.float32),
        "bfc1": scale * jax.random.normal(keys[9], (1, H_OUT), jnp.float32),
    }

    vector = extract_middle_forward(A, x, params)
    jax.block_until_ready(vector)
    assert vector.shape == (H_OUT,)

    # Tolerances account for the deliberate bf16 cast of A/X/weights (f32 accumulation).
    ref = reference_forward(A, x, params)
    assert jnp.allclose(vector, ref, rtol=5e-2, atol=5e-3), \
        f"max|diff|={float(jnp.max(jnp.abs(vector - ref))):.3e}"
    print("KERNEL_OK")
</pallas_src>

<mosaic_0001>
module attributes {stable_mosaic.version = 11 : i64} {
  func.func @_sage_stage1_kernel(%arg0: i32, %arg1: memref<128x256xbf16, #tpu.memory_space<vmem>>, %arg2: memref<256x128xbf16, #tpu.memory_space<vmem>>, %arg3: memref<400x128xbf16, #tpu.memory_space<vmem>>, %arg4: memref<128x128xbf16, #tpu.memory_space<vmem>>, %arg5: memref<128x256xbf16, #tpu.memory_space<vmem>>) attributes {dimension_semantics = [#tpu.dimension_semantics<parallel>], iteration_bounds = array<i64: 2>, scalar_prefetch = 0 : i64, scratch_operands = 1 : i64, tpu.core_type = #tpu.core_type<tc>, window_params = [{transform_indices = @transform_0, window_bounds = array<i64: 128, 256>}, {pipeline_mode = #tpu.pipeline_mode<synchronous>, transform_indices = @transform_1, window_bounds = array<i64: 256, 128>}, {pipeline_mode = #tpu.pipeline_mode<synchronous>, transform_indices = @transform_2, window_bounds = array<i64: 400, 128>}, {transform_indices = @transform_3, window_bounds = array<i64: 128, 128>}]} {
    %c128_i32 = arith.constant 128 : i32
    %0 = arith.muli %arg0, %c128_i32 : i32
    %1 = tpu.assume_multiple %0, 128 : i32
    %c0 = arith.constant 0 : index
    %c0_0 = arith.constant 0 : index
    %2 = vector.load %arg1[%c0, %c0_0] : memref<128x256xbf16, #tpu.memory_space<vmem>>, vector<128x256xbf16>
    %c0_1 = arith.constant 0 : index
    %c0_2 = arith.constant 0 : index
    %3 = vector.load %arg2[%c0_1, %c0_2] : memref<256x128xbf16, #tpu.memory_space<vmem>>, vector<256x128xbf16>
    %cst = arith.constant dense<0.000000e+00> : vector<128x128xf32>
    %4 = tpu.matmul %2, %3, %cst {dimension_numbers = #tpu.dot_dimension_numbers<[1], [0], [0], [1], [0, 0, 1, 1], [], []>} : vector<128x256xbf16>, vector<256x128xbf16>, vector<128x128xf32> -> vector<128x128xf32>
    %5 = arith.truncf %4 : vector<128x128xf32> to vector<128x128xbf16>
    %c0_3 = arith.constant 0 : index
    %c0_4 = arith.constant 0 : index
    %6 = vector.load %arg5[%c0_3, %c0_4] : memref<128x256xbf16, #tpu.memory_space<vmem>>, vector<128x128xbf16>
    tpu.vector_store %arg5[%c0_3, %c0_4], %5 {strides = array<i32>} : memref<128x256xbf16, #tpu.memory_space<vmem>>, vector<128x128xbf16>,
    %7 = arith.index_cast %1 : i32 to index
    %c0_5 = arith.constant 0 : index
    %8 = vector.load %arg2[%7, %c0_5] : memref<256x128xbf16, #tpu.memory_space<vmem>>, vector<128x128xbf16>
    %c0_6 = arith.constant 0 : index
    %c128 = arith.constant 128 : index
    %9 = vector.load %arg5[%c0_6, %c128] : memref<128x256xbf16, #tpu.memory_space<vmem>>, vector<128x128xbf16>
    tpu.vector_store %arg5[%c0_6, %c128], %8 {strides = array<i32>} : memref<128x256xbf16, #tpu.memory_space<vmem>>, vector<128x128xbf16>,
    %c0_7 = arith.constant 0 : index
    %c0_8 = arith.constant 0 : index
    %10 = vector.load %arg3[%c0_7, %c0_8] : memref<400x128xbf16, #tpu.memory_space<vmem>>, vector<256x128xbf16>
    %c256 = arith.constant 256 : index
    %c0_9 = arith.constant 0 : index
    %11 = vector.load %arg3[%c256, %c0_9] : memref<400x128xbf16, #tpu.memory_space<vmem>>, vector<1x128xbf16>
    %c0_10 = arith.constant 0 : index
    %c0_11 = arith.constant 0 : index
    %12 = vector.load %arg5[%c0_10, %c0_11] : memref<128x256xbf16, #tpu.memory_space<vmem>>, vector<128x256xbf16>
    %cst_12 = arith.constant dense<0.000000e+00> : vector<128x128xf32>
    %13 = tpu.matmul %12, %10, %cst_12 {dimension_numbers = #tpu.dot_dimension_numbers<[1], [0], [0], [1], [0, 0, 1, 1], [], []>} : vector<128x256xbf16>, vector<256x128xbf16>, vector<128x128xf32> -> vector<128x128xf32>
    %14 = arith.extf %11 : vector<1x128xbf16> to vector<1x128xf32>
    %15 = vector.broadcast %14 : vector<1x128xf32> to vector<128x128xf32>
    %16 = arith.addf %13, %15 : vector<128x128xf32>
    %cst_13 = arith.constant 0.000000e+00 : f32
    %17 = vector.broadcast %cst_13 : f32 to vector<128x128xf32>
    %18 = arith.maximumf %16, %17 : vector<128x128xf32>
    %c264 = arith.constant 264 : index
    %c0_14 = arith.constant 0 : index
    %19 = vector.load %arg3[%c264, %c0_14] : memref<400x128xbf16, #tpu.memory_space<vmem>>, vector<128x128xbf16>
    %c392 = arith.constant 392 : index
    %c0_15 = arith.constant 0 : index
    %20 = vector.load %arg3[%c392, %c0_15] : memref<400x128xbf16, #tpu.memory_space<vmem>>, vector<1x128xbf16>
    %21 = arith.truncf %18 : vector<128x128xf32> to vector<128x128xbf16>
    %cst_16 = arith.constant dense<0.000000e+00> : vector<128x128xf32>
    %22 = tpu.matmul %21, %19, %cst_16 {dimension_numbers = #tpu.dot_dimension_numbers<[1], [0], [0], [1], [0, 0, 1, 1], [], []>} : vector<128x128xbf16>, vector<128x128xbf16>, vector<128x128xf32> -> vector<128x128xf32>
    %23 = arith.extf %20 : vector<1x128xbf16> to vector<1x128xf32>
    %24 = vector.broadcast %23 : vector<1x128xf32> to vector<128x128xf32>
    %25 = arith.addf %22, %24 : vector<128x128xf32>
    %26 = tpu.iota {dimensions = array<i32: 0>} : vector<128x1xi32>
    %c128_i32_17 = arith.constant 128 : i32
    %27 = arith.muli %arg0, %c128_i32_17 : i32
    %28 = vector.broadcast %27 : i32 to vector<128x1xi32>
    %29 = arith.addi %26, %28 : vector<128x1xi32>
    %c8_i32 = arith.constant 8 : i32
    %30 = vector.broadcast %c8_i32 : i32 to vector<128x1xi32>
    %31 = arith.cmpi slt, %29, %30 : vector<128x1xi32>
    %cst_18 = arith.constant 0.000000e+00 : f32
    %32 = vector.shape_cast %31 : vector<128x1xi1> to vector<128x1xi1>
    %33 = vector.broadcast %32 : vector<128x1xi1> to vector<128x128xi1>
    %34 = vector.broadcast %cst_18 : f32 to vector<128x128xf32>
    %35 = arith.select %33, %25, %34 : vector<128x128xi1>, vector<128x128xf32>
    %36 = arith.truncf %35 : vector<128x128xf32> to vector<128x128xbf16>
    %c0_19 = arith.constant 0 : index
    %c0_20 = arith.constant 0 : index
    %37 = vector.load %arg4[%c0_19, %c0_20] : memref<128x128xbf16, #tpu.memory_space<vmem>>, vector<128x128xbf16>
    tpu.vector_store %arg4[%c0_19, %c0_20], %36 {strides = array<i32>} : memref<128x128xbf16, #tpu.memory_space<vmem>>, vector<128x128xbf16>,
    return
  }
  func.func @transform_0(%arg0: i32) -> (i32, i32) {
    %c0_i32 = arith.constant 0 : i32
    %c0_i32_0 = arith.constant 0 : i32
    return %arg0, %c0_i32 : i32, i32
  }
  func.func @transform_1(%arg0: i32) -> (i32, i32) {
    %c0_i32 = arith.constant 0 : i32
    %c0_i32_0 = arith.constant 0 : i32
    %c0_i32_1 = arith.constant 0 : i32
    return %c0_i32, %c0_i32_0 : i32, i32
  }
  func.func @transform_2(%arg0: i32) -> (i32, i32) {
    %c0_i32 = arith.constant 0 : i32
    %c0_i32_0 = arith.constant 0 : i32
    %c0_i32_1 = arith.constant 0 : i32
    return %c0_i32, %c0_i32_0 : i32, i32
  }
  func.func @transform_3(%arg0: i32) -> (i32, i32) {
    %c0_i32 = arith.constant 0 : i32
    %c0_i32_0 = arith.constant 0 : i32
    return %arg0, %c0_i32 : i32, i32
  }
}

</mosaic_0001>

<bundles_post_ra>
// kernel: tpu_custom_call.1
= control target key start
LH: loop header
LB: loop body
LE: loop exit
PB: predicated region body
PF: predicated region fallthrough
CT: control target
= control target key end

     0   :  { %8 = vsyncpa [#allocation4], 0  ;;  %s2408_s0 = inlined_call_operand.hbm [shape: bf16[256,256], index: 0, kind: input, shape index: {}]   ;;  %s2409_s1 = inlined_call_operand.hbm [shape: bf16[256,128], index: 1, kind: input, shape index: {}]   ;;  %s2410_s2 = inlined_call_operand.hbm [shape: bf16[400,128], index: 2, kind: input, shape index: {}]   ;;  %s2411_s3 = inlined_call_operand.hbm [shape: bf16[256,128], index: 3, kind: output, shape index: {}]  }
   0x1   :  { %10 = vsyncpa [#allocation4 + $0x1], 0 }
   0x2   :  { %11 = vsyncpa [#allocation7], 0 }
   0x3   :  { %12 = vsyncpa [#allocation5], 0 }
   0x4   :  { %14 = vsyncpa [#allocation5 + $0x1], 0  ;;  %s2052_s12 = smov 0   ;;  %s2054_s13 = smov 0  }
   0x5   :  { %s2056_s14 = smov 0   ;;  %s2058_s15 = smov 0  }
   0x6 LB: > { %s2073_s16 = sadd.s32 4294967295, %s2020_s15   ;;  %s1360_s17 = sadd.s32 4294967294, %s2020_s15   ;;  %s2020_s15 = sphi %s2058_s15, %s2431_s15   ;;  %s2016_s14 = sphi %s2056_s14, %s2430_s14   ;;  %s2012_s13 = sphi %s2054_s13, %s2429_s13   ;;  %s2008_s12 = sphi %s2052_s12, %s2428_s12  }
   0x7   : > { %p40_p0 = scmp.ne.s32.totalorder %s2012_s13, %s2008_s12  ;;  %p2412_p1 = scmp.eq.s32.totalorder %s2073_s16, 0 }
   0x8   : > { %p112_p3 = scmp.eq.s32.totalorder %s1360_s17, 1  ;;  %p1361_p5 = scmp.ge.s32.totalorder %s2020_s15, 1 }
   0x9   : > { %p2082_p4 = por %p2412_p1, %p40_p0  ;;  %p119_p7 = scmp.lt.s32.totalorder %s2020_s15, 3 }
   0xa   : > { %p2087_p6 = por %p112_p3, %p40_p0  ;;  %s2022_s21 = smov [#allocation6]  }
   0xb   : > { %s2415_s18 = scalar_select %p2082_p4, 1, 0 }
   0xc   : > { %s2416_s19 = scalar_select %p2087_p6, 1, 0 }
   0xd   : > { %p2092_p8 = pnand %p1361_p5, %p119_p7  ;;  %s131_s22 = sshll.u32 %s2022_s21, 4  ;;  %s2096_s22 = int_to_ptr.vmem [resolvable:$true] %s131_s22 }
   0xe   : > { %s2023_s24 = smov [#allocation8]   ;;  %s1864_s28 = scalar_lea.hbm %s2409_s1, 2048 }
   0xf   : > { %p1731_p9 = pneg %p2092_p8  ;;  %s144_s25 = sshll.u32 %s2023_s24, 4  ;;  %s2107_s25 = int_to_ptr.vmem [resolvable:$true] %s144_s25 }
  0x10   : > { %p1865_p12 = scmp.ne.s32.totalorder %s2409_s1, %s1864_s28  ;;  %p1871_p5 = scmp.lt.u32.totalorder %s1864_s28, %s2409_s1 }
  0x11   : > { %p2103_p11 = pnand %p1731_p9, %p2412_p1 }
  0x13   : > { %p1866_p13 = pneg %p2103_p11 }
  0x15   : > { %p1867_p0 = pnand %p1866_p13, %p1865_p12 }
  0x17   : > { %p1868_p3 = pneg %p1867_p0 }
  0x19   : > { %p1873_p7 = pnand %p1871_p5, %p1868_p3 }
  0x1b   : > { %1876 = shalt.err (!%p1873_p7)
}
  0x1c   : > { %s1877_s6 = scalar_lea.vmem %s2096_s22, 2048  ;;  %p1885_p2 = scmp.lt.s32.totalorder %s2096_s22, %s2096_s22 }
  0x1d   : > { %p1878_p9 = scmp.ne.s32.totalorder %s2096_s22, %s1877_s6  ;;  %p1886_p12 = scmp.lt.s32.totalorder %s1877_s6, %s1877_s6 }
  0x1f   : > { %p1880_p10 = pnand %p1878_p9, %p1866_p13  ;;  %p1887_p0 = por %p1886_p12, %p1885_p2 }
  0x21   : > { %p1881_p1 = pneg %p1880_p10 }
  0x23   : > { %p1888_p6 = pnand %p1887_p0, %p1881_p1 }
  0x25   : > { %1891 = shalt.err (!%p1888_p6)
}
  0x26   : > { %s2024_s7 = smov 64   ;;  %s2025_s8 = smov 4  }
  0x27   : > { %1734 = dma.hbm_to_vmem [thread:$0]  (!%p2103_p11), %s2409_s1, 2048, %s2096_s22, [#allocation7], %s2024_s7, %s2024_s7, %s2025_s8  }
  0x28   : > { %s1892_s21 = scalar_lea.hbm %s2410_s2, 3200 }
  0x29   : > { %p1893_p2 = scmp.ne.s32.totalorder %s2410_s2, %s1892_s21  ;;  %p1899_p10 = scmp.lt.u32.totalorder %s1892_s21, %s2410_s2 }
  0x2b   : > { %p1895_p1 = pnand %p1893_p2, %p1866_p13 }
  0x2d   : > { %p1896_p6 = pneg %p1895_p1 }
  0x2f   : > { %p1901_p3 = pnand %p1899_p10, %p1896_p6 }
  0x31   : > { %1904 = shalt.err (!%p1901_p3)
}
  0x32   : > { %s1905_s22 = scalar_lea.vmem %s2107_s25, 3200  ;;  %p1913_p12 = scmp.lt.s32.totalorder %s2107_s25, %s2107_s25 }
  0x33   : > { %p1906_p5 = scmp.ne.s32.totalorder %s2107_s25, %s1905_s22  ;;  %p1914_p0 = scmp.lt.s32.totalorder %s1905_s22, %s1905_s22 }
  0x35   : > { %p1908_p7 = pnand %p1906_p5, %p1866_p13  ;;  %p1915_p2 = por %p1914_p0, %p1913_p12 }
  0x37   : > { %p1909_p9 = pneg %p1908_p7 }
  0x39   : > { %p1916_p1 = pnand %p1915_p2, %p1909_p9 }
  0x3b   : > { %1919 = shalt.err (!%p1916_p1)
}
  0x3c   : > { %1737 = dma.hbm_to_vmem [thread:$0]  (!%p2103_p11), %s2410_s2, 3200, %s2107_s25, [#allocation7], %s2024_s7, %s2024_s7, %s2025_s8  }
  0x3d   : > { %s2162_s4 = sadd.s32 1, %s2020_s15   ;;  %s27_s23 = sadd.s32 1, %s2016_s14 }
  0x3e   : > { %s24_s5 = ssub.s32 %s2020_s15, %s2162_s4  ;;  %p34_p13 = scmp.ne.s32.totalorder %s2016_s14, %s2012_s13 }
  0x3f   : > { %p25_p6 = scmp.eq.s32.totalorder %s24_s5, 0  ;;  %p35_p10 = scmp.eq.s32.totalorder %s2020_s15, 0 }
  0x40   : > { %p2419_p3 = scmp.eq.s32.totalorder %s2073_s16, 1  ;;  %p1748_p7 = scmp.lt.s32.totalorder %s2020_s15, 2 }
  0x41   : > { %s2178_s9 = scalar_select %p25_p6, %s2016_s14, %s27_s23  }
  0x42   : > { %p2172_p5 = por %p2419_p3, %p34_p13  ;;  %p36_p9 = por %p35_p10, %p34_p13 }
  0x43   : > { %s158_s10 = sand.u32 1, %s2016_s14   ;;  %s1462_s25 = sshll.u32 %s2020_s15, 11 }
  0x44   : > { %s2420_s6 = scalar_select %p2172_p5, 1, 0 }
  0x45   : > { %s1365_s11 = sshll.u32 %s158_s10, 7  ;;  %s2185_s17 = scalar_lea.hbm %s2408_s0, %s1462_s25 }
  0x46   : > { %s162_s21 = scalar_lea.vmem [#allocation3], %s1365_s11  ;;  %p2189_p11 = pnand %p1748_p7, %p36_p9 }
  0x47   : > { %s170_s24 = sshll.u32 %s162_s21, 4  ;;  %s2193_s27 = scalar_lea.sflag [#allocation4], %s158_s10  ;;  %s2187_s24 = int_to_ptr.vmem [resolvable:$true] %s170_s24 }
  0x48   : > { %s1920_s28 = scalar_lea.hbm %s2185_s17, 2048  ;;  %p1922_p0 = pneg %p2189_p11 }
  0x49   : > { %p1921_p12 = scmp.ne.s32.totalorder %s2185_s17, %s1920_s28  ;;  %s1925_s30 = scalar_lea.hbm %s2408_s0, 4096 }
  0x4a   : > { %p1926_p13 = scmp.lt.u32.totalorder %s2185_s17, %s2408_s0  ;;  %p1927_p6 = scmp.lt.u32.totalorder %s1925_s30, %s1920_s28 }
  0x4b   : > { %p1923_p2 = pnand %p1922_p0, %p1921_p12  ;;  %p1929_p3 = scmp.lt.u32.totalorder %s1920_s28, %s2185_s17 }
  0x4c   : > { %p1928_p10 = por %p1927_p6, %p1926_p13 }
  0x4d   : > { %p1924_p1 = pneg %p1923_p2 }
  0x4e   : > { %p1930_p7 = por %p1929_p3, %p1928_p10 }
  0x50   : > { %p1931_p9 = pnand %p1930_p7, %p1924_p1 }
  0x52   : > { %1934 = shalt.err (!%p1931_p9)
}
  0x53   : > { %s1935_s10 = scalar_lea.vmem %s2187_s24, 2048  ;;  %s2026_s11 = smov [#allocation3]  }
  0x54   : > { %p1936_p12 = scmp.ne.s32.totalorder %s2187_s24, %s1935_s10  ;;  %s1940_s25 = sshll.u32 %s2026_s11, 4  ;;  %s1941_s25 = int_to_ptr.vmem [resolvable:$false] %s1940_s25 }
  0x55   : > { %s1942_s7 = scalar_lea.vmem %s1941_s25, 4096  ;;  %p1943_p4 = scmp.lt.s32.totalorder %s2187_s24, %s1941_s25 }
  0x56   : > { %p1938_p2 = pnand %p1936_p12, %p1922_p0  ;;  %p1944_p13 = scmp.lt.s32.totalorder %s1942_s7, %s1935_s10 }
  0x58   : > { %p1939_p5 = pneg %p1938_p2  ;;  %p1945_p6 = por %p1944_p13, %p1943_p4 }
  0x5a   : > { %p1946_p10 = pnand %p1945_p6, %p1939_p5 }
  0x5c   : > { %1949 = shalt.err (!%p1946_p10)
}
  0x5d   : > { %s2027_s8 = smov 128   ;;  %s2028_s21 = smov 8  }
  0x5e   : > { %1741 = dma.hbm_to_vmem [thread:$0]  (!%p2189_p11), %s2185_s17, 2048, %s2187_s24, %s2193_s27, %s2027_s8, %s2027_s8, %s2028_s21  }
  0x5f   : > { %182 = sbr.rel (%p2092_p8) target bundleno = 872 (0x368), region = 32  ;;  %s2224_s28 = sand.u32 (!%p2092_p8), 1, %s2012_s13  }
  0x60   : > { %s1370_s22 = sshll.u32 (!%p2092_p8), %s2224_s28, 7  ;;  %s185_s29 = scalar_lea.sflag (!%p2092_p8), [#allocation4], %s2224_s28 }
  0x61   : > { %s2228_s30 = scalar_lea.vmem (!%p2092_p8), [#allocation3], %s1370_s22  ;;  %p2422_p4 = scmp.ne.s32.totalorder (!%p2092_p8), %s2415_s18, 0 }
  0x66   : > { %1995 = dma.done.wait (%p2422_p4), %s185_s29, 2048  }
  0x67   : > { %1997 = vsyncadd (%p2422_p4), %s185_s29, 4294965248  ;;  %p2423_p5 = scmp.eq.s32.totalorder %s2073_s16, 0 }
  0x69   : > { %1999 = dma.done.wait (%p2423_p5), [#allocation7], 5248   ;;  %p2424_p8 = pmov %p2423_p5 }
  0x6a   : > { %v1792_v0 = vld [vmem:[#allocation6 + $0x40] sm:$0xff]   ;;  %v1794_v2 = vld [vmem:[#allocation6 + $0x48] sm:$0xff]   ;;  %v1796_v4 = vld [vmem:[#allocation6 + $0x50] sm:$0xff]   ;;  %s1374_s18 = sshll.u32 %s2073_s16, 7  ;;  %s1373_s26 = sshll.u32 %s2224_s28, 6 }
  0x6b   : > { %2001 = vsyncadd (%p2424_p8), [#allocation7], 4294962048  ;;  %v1793_v1 = vld [vmem:[#allocation6] sm:$0xff]   ;;  %1527 = vmatprep.subr.bf16.mxu0 %v1792_v0  ;;  %v1795_v3 = vld [vmem:[#allocation6 + $0x8] sm:$0xff]   ;;  %s560_s20 = sshra.s32 %s1374_s18, 3  ;;  %s2311_s27 = scalar_lea.vmem [#allocation9], %s1373_s26 }
  0x6c   : > { %1528 = vmatpush3.bf16.msra.mxu0 %v1793_v1  ;;  %v1797_v5 = vld [vmem:[#allocation6 + $0x10] sm:$0xff]   ;;  %v1798_v6 = vld [vmem:[#allocation6 + $0x58] sm:$0xff]   ;;  %v1800_v8 = vld [vmem:[#allocation6 + $0x60] sm:$0xff]   ;;  %s1407_s17 = sshll.u32 %s560_s20, 2  ;;  %s1266_s23 = sshll.u32 %s2311_s27, 4  ;;  %s2362_s23 = int_to_ptr.vmem [resolvable:$true] %s1266_s23 }
  0x6d   : > { %1529 = vmatprep.subr.bf16.mxu0 %v1794_v2  ;;  %v1799_v7 = vld [vmem:[#allocation6 + $0x18] sm:$0xff]   ;;  %v1801_v9 = vld [vmem:[#allocation6 + $0x20] sm:$0xff]   ;;  %v1802_v10 = vld [vmem:[#allocation6 + $0x68] sm:$0xff]   ;;  %s2257_s24 = scalar_lea.vmem [#allocation6], %s1407_s17  ;;  %s1479_s5 = sshll.u32 %s2073_s16, 10 }
  0x6e   : > { %v1810_v11 = vld [vmem:[%s2228_s30 + $0x4] ss:$8 sps:$4 sm:$0xff]   ;;  %v1804_v13 = vld [vmem:[#allocation6 + $0x70] sm:$0xff]   ;;  %v1806_v15 = vld [vmem:[#allocation6 + $0x78] sm:$0xff]   ;;  %s2360_s25 = scalar_lea.hbm %s2411_s3, %s1479_s5  ;;  %s1253_s16 = scalar_lea.sflag [#allocation5], %s2224_s28 }
  0x6f   : > { %v1803_v12 = vld [vmem:[#allocation6 + $0x28] sm:$0xff]   ;;  %479 = vmatprep.mubr.bf16.mxu0 %v1810_v11  ;;  %v1805_v14 = vld [vmem:[#allocation6 + $0x30] sm:$0xff]   ;;  %v1807_v16 = vld [vmem:[#allocation6 + $0x38] sm:$0xff]   ;;  %s1950_s7 = scalar_lea.vmem %s2362_s23, 1024  ;;  %p2425_p0 = scmp.ne.s32.totalorder %s2420_s6, 0 }
  0x70   : > { %1530 = vmatpush3.bf16.msra.mxu0 %v1795_v3  ;;  %v1832_v17 = vld [vmem:[#allocation8 + $0x40] sm:$0xff]   ;;  %v1811_v20 = vld [vmem:[%s2228_s30 + $0x14] ss:$8 sps:$4 sm:$0xff]   ;;  %v1834_v21 = vld [vmem:[#allocation8 + $0x48] sm:$0xff]   ;;  %p1951_p11 = scmp.ne.s32.totalorder %s2362_s23, %s1950_s7  ;;  %s2029_s8 = smov [#allocation9]  }
  0x71   : > { %1531 = vmatprep.subr.bf16.mxu0 %v1796_v4  ;;  %v1808_v18 = vld [vmem:[%s2228_s30] ss:$8 sps:$4 sm:$0xff]   ;;  %1591 = vmatprep.subr.bf16.mxu1 %v1832_v17  ;;  %v1836_v23 = vld [vmem:[#allocation8 + $0x50] sm:$0xff]   ;;  %v1838_v25 = vld [vmem:[#allocation8 + $0x58] sm:$0xff]   ;;  %s1954_s21 = sshll.u32 %s2029_s8, 4  ;;  %s1955_s21 = int_to_ptr.vmem [resolvable:$false] %s1954_s21 }
  0x72   : > { %v1833_v19 = vld [vmem:[#allocation8] sm:$0xff]   ;;  %v1835_v22 = vld [vmem:[#allocation8 + $0x8] sm:$0xff]   ;;  %v1837_v24 = vld [vmem:[#allocation8 + $0x10] sm:$0xff]   ;;  %p1952_p1 = pnand %p1951_p11, %p2425_p0  ;;  %s1956_s22 = scalar_lea.vmem %s1955_s21, 2048 }
  0x73   : > { %1592 = vmatpush3.bf16.msra.mxu1 %v1833_v19  ;;  %v1813_v26 = vld [vmem:[%s2228_s30 + $0x10] ss:$8 sps:$4 sm:$0xff]   ;;  %v1814_v27 = vld [vmem:[%s2228_s30 + $0x24] ss:$8 sps:$4 sm:$0xff]   ;;  %v1816_v32 = vld [vmem:[%s2228_s30 + $0x20] ss:$8 sps:$4 sm:$0xff]   ;;  %p1957_p7 = scmp.lt.s32.totalorder %s2362_s23, %s1955_s21  ;;  %p1958_p9 = scmp.lt.s32.totalorder %s1956_s22, %s1950_s7 }
  0x74   : > { %1532 = vmatpush3.bf16.msra.mxu0 %v1797_v5  ;;  %1593 = vmatprep.subr.bf16.mxu1 %v1834_v21  ;;  %v1839_v28 = vld [vmem:[#allocation8 + $0x18] sm:$0xff]   ;;  %v1840_v29 = vld [vmem:[#allocation8 + $0x60] sm:$0xff]   ;;  %v1842_v31 = vld [vmem:[#allocation8 + $0x68] sm:$0xff]   ;;  %p1953_p3 = pneg %p1952_p1 }
  0x75   : > { %1533 = vmatprep.subr.bf16.mxu0 %v1798_v6  ;;  %v1841_v30 = vld [vmem:[#allocation8 + $0x20] sm:$0xff]   ;;  %v1843_v33 = vld [vmem:[#allocation8 + $0x28] sm:$0xff]   ;;  %v1817_v34 = vld [vmem:[%s2228_s30 + $0x34] ss:$8 sps:$4 sm:$0xff]   ;;  %p1959_p12 = por %p1958_p9, %p1957_p7 }
  0x76   : > { %v1819_v35 = vld [vmem:[%s2228_s30 + $0x30] ss:$8 sps:$4 sm:$0xff]   ;;  %v1820_v36 = vld [vmem:[%s2228_s30 + $0x44] ss:$8 sps:$4 sm:$0xff]   ;;  %v1822_v37 = vld [vmem:[%s2228_s30 + $0x40] ss:$8 sps:$4 sm:$0xff]  }
  0x77   : > { %1594 = vmatpush3.bf16.msra.mxu1 %v1835_v22  ;;  %v1823_v38 = vld [vmem:[%s2228_s30 + $0x54] ss:$8 sps:$4 sm:$0xff]   ;;  %v1825_v39 = vld [vmem:[%s2228_s30 + $0x50] ss:$8 sps:$4 sm:$0xff]   ;;  %v1826_v40 = vld [vmem:[%s2228_s30 + $0x64] ss:$8 sps:$4 sm:$0xff]   ;;  %p1960_p2 = pnand %p1959_p12, %p1953_p3 }
  0x78   : > { %1534 = vmatpush3.bf16.msra.mxu0 %v1799_v7  ;;  %1595 = vmatprep.subr.bf16.mxu1 %v1836_v23  ;;  %v1828_v41 = vld [vmem:[%s2228_s30 + $0x60] ss:$8 sps:$4 sm:$0xff]   ;;  %v1829_v42 = vld [vmem:[%s2228_s30 + $0x74] ss:$8 sps:$4 sm:$0xff]   ;;  %v1831_v43 = vld [vmem:[%s2228_s30 + $0x70] ss:$8 sps:$4 sm:$0xff]  }
  0x79   : > { %1535 = vmatprep.subr.bf16.mxu0 %v1800_v8  ;;  %v1844_v44 = vld [vmem:[#allocation8 + $0x70] sm:$0xff]   ;;  %v1846_v46 = vld [vmem:[#allocation8 + $0x78] sm:$0xff]   ;;  %v1848_v48 = vld [vmem:[%s2257_s24] sm:$0xff]  }
  0x7a   : > { %v1845_v45 = vld [vmem:[#allocation8 + $0x30] sm:$0xff]   ;;  %v1847_v47 = vld [vmem:[#allocation8 + $0x38] sm:$0xff]   ;;  %818 = vmatprep.mubr.bf16.mxu1 %v1848_v48  ;;  %v1856_v49 = vld [vmem:[#allocation8 + $0x84] sm:$0xff]  }
  0x7b   : > { %1596 = vmatpush3.bf16.msra.mxu1 %v1837_v24  ;;  %v1857_v50 = vld [vmem:[#allocation8 + $0x8c] sm:$0xff]   ;;  %v1858_v51 = vld [vmem:[#allocation8 + $0x94] sm:$0xff]  }
  0x7c   : > { %1536 = vmatpush3.bf16.msra.mxu0 %v1801_v9  ;;  %1597 = vmatprep.subr.bf16.mxu1 %v1838_v25  ;;  %v1849_v58 = vld [vmem:[%s2257_s24 + $0x8] sm:$0xff]   ;;  %v1850_v2 = vld [vmem:[%s2257_s24 + $0x10] sm:$0xff]  }
  0x7d   : > { %1537 = vmatprep.subr.bf16.mxu0 %v1802_v10  ;;  %v1851_v10 = vld [vmem:[%s2257_s24 + $0x18] sm:$0xff]  }
  0x7f   : > { %1598 = vmatpush3.bf16.msra.mxu1 %v1839_v28 }
  0x80   : > { %1538 = vmatpush3.bf16.msra.mxu0 %v1803_v12  ;;  %1599 = vmatprep.subr.bf16.mxu1 %v1840_v29 }
  0x81   : > { %1539 = vmatprep.subr.bf16.mxu0 %v1804_v13 }
  0x83   : > { %1600 = vmatpush3.bf16.msra.mxu1 %v1841_v30 }
  0x84   : > { %1540 = vmatpush3.bf16.msra.mxu0 %v1805_v14  ;;  %1601 = vmatprep.subr.bf16.mxu1 %v1842_v31 }
  0x85   : > { %1541 = vmatprep.subr.bf16.mxu0 %v1806_v15 }
  0x87   : > { %1602 = vmatpush3.bf16.msra.mxu1 %v1843_v33 }
  0x88   : > { %1542 = vmatpush3.bf16.msra.mxu0 %v1807_v16  ;;  %1603 = vmatprep.subr.bf16.mxu1 %v1844_v44 }
  0x89   : > { %1671 = vmatprep.subr.bf16.mxu0 %v1856_v49 }
  0x8b   : > { %480 = vmatmul.mubr.bf16.vlgmr.msra.gmra.mrb[0].mxu0 %v1808_v18  ;;  %1604 = vmatpush3.bf16.msra.mxu1 %v1845_v45  ;;  %v1852_v18 = vld [vmem:[%s2257_s24 + $0x20] sm:$0xff]  }
  0x8c   : > { %487 = vmatprep.mubr.bf16.mxu0 %v1811_v20  ;;  %1605 = vmatprep.subr.bf16.mxu1 %v1846_v46 }
  0x8d   : > { %1672 = vmatpush3.bf16.msra.mxu0 %v1856_v49 }
  0x8e   : > { %1673 = vmatprep.subr.bf16.mxu0 %v1857_v50 }
  0x8f   : > { %1606 = vmatpush3.bf16.msra.mxu1 %v1847_v47 }
  0x90   : > { %1703 = vmatprep.subr.bf16.mxu1 %v1856_v49 }
  0x91   : > { %1674 = vmatpush3.bf16.msra.mxu0 %v1857_v50 }
  0x92   : > { %1675 = vmatprep.subr.bf16.mxu0 %v1858_v51 }
  0x93   : > { %488 = vmatmul.mubr.bf16.gmra.mrb[4].mxu0 %v1813_v26  ;;  %v1853_v26 = vld [vmem:[%s2257_s24 + $0x28] sm:$0xff]  }
  0x94   : > { %495 = vmatprep.mubr.bf16.mxu0 %v1814_v27 }
  0x95   : > { %1676 = vmatpush3.bf16.msra.mxu0 %v1858_v51 }
  0x9b   : > { %496 = vmatmul.mubr.bf16.gmra.mrb[8].mxu0 %v1816_v32 }
  0x9c   : > { %503 = vmatprep.mubr.bf16.mxu0 %v1817_v34  ;;  %v1854_v34 = vld [vmem:[%s2257_s24 + $0x30] sm:$0xff]  }
  0xa3   : > { %504 = vmatmul.mubr.bf16.gmra.mrb[12].mxu0 %v1819_v35 }
  0xa4   : > { %511 = vmatprep.mubr.bf16.mxu0 %v1820_v36 }
  0xab   : > { %512 = vmatmul.mubr.bf16.gmra.mrb[16].mxu0 %v1822_v37 }
  0xac   : > { %519 = vmatprep.mubr.bf16.mxu0 %v1823_v38 }
  0xb3   : > { %520 = vmatmul.mubr.bf16.gmra.mrb[20].mxu0 %v1825_v39 }
  0xb4   : > { %527 = vmatprep.mubr.bf16.mxu0 %v1826_v40 }
  0xbb   : > { %528 = vmatmul.mubr.bf16.gmra.mrb[24].mxu0 %v1828_v41 }
  0xbc   : > { %535 = vmatprep.mubr.bf16.mxu0 %v1829_v42  ;;  %v1855_v42 = vld [vmem:[%s2257_s24 + $0x38] sm:$0xff]  }
  0xc3   : > { %536 = vmatmul.mubr.bf16.gmra.mrb[28].mxu0 %v1831_v43 }
 0x15e   : > { %v1543_v52 = vpop.f32.mrb[0].mxu0 }
 0x15f   : > { %v1544_v53 = vpop.f32.mrb[1].mxu0 }
 0x160   : > { %v1545_v54 = vadd.f32 %v1544_v53, %v1543_v52  ;;  %v1546_v55 = vpop.f32.mrb[2].mxu0  ;;  %v1860_v52 = vld [vmem:[#allocation8 + $0xa4] sm:$0xff]   ;;  %v1861_v53 = vld [vmem:[#allocation8 + $0xac] sm:$0xff]  }
 0x161   : > { %v1547_v56 = vpop.f32.mrb[3].mxu0 }
 0x162   : > { %v1548_v57 = vadd.f32 %v1547_v56, %v1546_v55  ;;  %v1863_v55 = vld [vmem:[#allocation8 + $0xbc] sm:$0xff]   ;;  %v686_v56 = vlaneseq }
 0x164   : > { %v544_v59 = vpack.c.bf16 %v1548_v57, %v1545_v54  ;;  %v1862_v54 = vld [vmem:[#allocation8 + $0xb4] sm:$0xff]   ;;  %v2267_v57 = vshrl.u32 %v686_v56, 7 }
 0x166   : > { %v1549_v60 = vpop.f32.mrb[4].mxu0  ;;  %819 = vmatmul.mubr.bf16.vlgmr.msra.gmra.mrb[0].mxu1 %v544_v59 }
 0x167   : > { %v1550_v61 = vpop.f32.mrb[5].mxu0  ;;  %826 = vmatprep.mubr.bf16.mxu1 %v1849_v58  ;;  %1711 = vmatpush3.bf16.msra.mxu1 %v1856_v49  ;;  %v668_v58 = vld [vmem:[#allocation8 + $0x80] sm:$0x1] }
 0x168   : > { %v1551_v62 = vadd.f32 %v1550_v61, %v1549_v60  ;;  %v1552_v63 = vpop.f32.mrb[6].mxu0  ;;  %1704 = vmatprep.subr.bf16.mxu1 %v1857_v50  ;;  %v685_v59 = vunpack.c.l.bf16 %v668_v58  ;;  %v688_v60 = vsub.s32 0, %v2267_v57 }
 0x169   : > { %v1553_v0 = vpop.f32.mrb[7].mxu0 }
 0x16a   : > { %v1554_v1 = vadd.f32 %v1553_v0, %v1552_v63 }
 0x16b   : > { %1712 = vmatpush3.bf16.msra.mxu1 %v1857_v50 }
 0x16c   : > { %v545_v3 = vpack.c.bf16 %v1554_v1, %v1551_v62  ;;  %1705 = vmatprep.subr.bf16.mxu1 %v1858_v51  ;;  %v2272_v62 = vrot.slane %v685_v59, %v688_v60 }
 0x16e   : > { %v1555_v4 = vpop.f32.mrb[8].mxu0  ;;  %827 = vmatmul.mubr.bf16.gmra.mrb[4].mxu1 %v545_v3 }
 0x16f   : > { %v1556_v5 = vpop.f32.mrb[9].mxu0  ;;  %834 = vmatprep.mubr.bf16.mxu1 %v1850_v2  ;;  %1713 = vmatpush3.bf16.msra.mxu1 %v1858_v51  ;;  %v1859_v51 = vld [vmem:[#allocation8 + $0x9c] sm:$0xff]  }
 0x170   : > { %v1557_v6 = vadd.f32 %v1556_v5, %v1555_v4  ;;  %v1558_v7 = vpop.f32.mrb[10].mxu0  ;;  %1677 = vmatprep.subr.bf16.mxu0 %v1859_v51  ;;  %1706 = vmatprep.subr.bf16.mxu1 %v1859_v51 }
 0x171   : > { %v1559_v8 = vpop.f32.mrb[11].mxu0  ;;  %1678 = vmatpush3.bf16.msra.mxu0 %v1859_v51 }
 0x172   : > { %v1560_v9 = vadd.f32 %v1559_v8, %v1558_v7  ;;  %1679 = vmatprep.subr.bf16.mxu0 %v1860_v52 }
 0x173   : > { %1714 = vmatpush3.bf16.msra.mxu1 %v1859_v51 }
 0x174   : > { %v546_v11 = vpack.c.bf16 %v1560_v9, %v1557_v6  ;;  %1707 = vmatprep.subr.bf16.mxu1 %v1860_v52 }
 0x175   : > { %1680 = vmatpush3.bf16.msra.mxu0 %v1860_v52 }
 0x176   : > { %v1561_v12 = vpop.f32.mrb[12].mxu0  ;;  %835 = vmatmul.mubr.bf16.gmra.mrb[8].mxu1 %v546_v11  ;;  %1681 = vmatprep.subr.bf16.mxu0 %v1861_v53 }
 0x177   : > { %v1562_v13 = vpop.f32.mrb[13].mxu0  ;;  %842 = vmatprep.mubr.bf16.mxu1 %v1851_v10  ;;  %1715 = vmatpush3.bf16.msra.mxu1 %v1860_v52 }
 0x178   : > { %v1563_v14 = vadd.f32 %v1562_v13, %v1561_v12  ;;  %v1564_v15 = vpop.f32.mrb[14].mxu0  ;;  %1708 = vmatprep.subr.bf16.mxu1 %v1861_v53 }
 0x179   : > { %v1565_v16 = vpop.f32.mrb[15].mxu0  ;;  %1682 = vmatpush3.bf16.msra.mxu0 %v1861_v53 }
 0x17a   : > { %v1566_v17 = vadd.f32 %v1565_v16, %v1564_v15  ;;  %1683 = vmatprep.subr.bf16.mxu0 %v1862_v54 }
 0x17b   : > { %1716 = vmatpush3.bf16.msra.mxu1 %v1861_v53 }
 0x17c   : > { %v547_v19 = vpack.c.bf16 %v1566_v17, %v1563_v14  ;;  %1709 = vmatprep.subr.bf16.mxu1 %v1862_v54 }
 0x17d   : > { %1684 = vmatpush3.bf16.msra.mxu0 %v1862_v54 }
 0x17e   : > { %v1567_v20 = vpop.f32.mrb[16].mxu0  ;;  %843 = vmatmul.mubr.bf16.gmra.mrb[12].mxu1 %v547_v19  ;;  %1685 = vmatprep.subr.bf16.mxu0 %v1863_v55 }
 0x17f   : > { %v1568_v21 = vpop.f32.mrb[17].mxu0  ;;  %850 = vmatprep.mubr.bf16.mxu1 %v1852_v18  ;;  %1717 = vmatpush3.bf16.msra.mxu1 %v1862_v54 }
 0x180   : > { %v1569_v22 = vadd.f32 %v1568_v21, %v1567_v20  ;;  %v1570_v23 = vpop.f32.mrb[18].mxu0  ;;  %1710 = vmatprep.subr.bf16.mxu1 %v1863_v55 }
 0x181   : > { %v1571_v24 = vpop.f32.mrb[19].mxu0  ;;  %1686 = vmatpush3.bf16.msra.mxu0 %v1863_v55 }
 0x182   : > { %v1572_v25 = vadd.f32 %v1571_v24, %v1570_v23 }
 0x183   : > { %1718 = vmatpush3.bf16.msra.mxu1 %v1863_v55 }
 0x184   : > { %v548_v27 = vpack.c.bf16 %v1572_v25, %v1569_v22 }
 0x186   : > { %v1573_v28 = vpop.f32.mrb[20].mxu0  ;;  %851 = vmatmul.mubr.bf16.gmra.mrb[16].mxu1 %v548_v27 }
 0x187   : > { %v1574_v29 = vpop.f32.mrb[21].mxu0  ;;  %858 = vmatprep.mubr.bf16.mxu1 %v1853_v26 }
 0x188   : > { %v1575_v30 = vadd.f32 %v1574_v29, %v1573_v28  ;;  %v1576_v31 = vpop.f32.mrb[22].mxu0 }
 0x189   : > { %v1577_v32 = vpop.f32.mrb[23].mxu0 }
 0x18a   : > { %v1578_v33 = vadd.f32 %v1577_v32, %v1576_v31 }
 0x18c   : > { %v549_v35 = vpack.c.bf16 %v1578_v33, %v1575_v30 }
 0x18e   : > { %v1579_v36 = vpop.f32.mrb[24].mxu0  ;;  %859 = vmatmul.mubr.bf16.gmra.mrb[20].mxu1 %v549_v35 }
 0x18f   : > { %v1580_v37 = vpop.f32.mrb[25].mxu0  ;;  %866 = vmatprep.mubr.bf16.mxu1 %v1854_v34 }
 0x190   : > { %v1581_v38 = vadd.f32 %v1580_v37, %v1579_v36  ;;  %v1582_v39 = vpop.f32.mrb[26].mxu0 }
 0x191   : > { %v1583_v40 = vpop.f32.mrb[27].mxu0 }
 0x192   : > { %v1584_v41 = vadd.f32 %v1583_v40, %v1582_v39 }
 0x194   : > { %v550_v43 = vpack.c.bf16 %v1584_v41, %v1581_v38 }
 0x196   : > { %v1585_v44 = vpop.f32.mrb[28].mxu0  ;;  %867 = vmatmul.mubr.bf16.gmra.mrb[24].mxu1 %v550_v43 }
 0x197   : > { %v1586_v45 = vpop.f32.mrb[29].mxu0  ;;  %874 = vmatprep.mubr.bf16.mxu1 %v1855_v42 }
 0x198   : > { %v1587_v46 = vadd.f32 %v1586_v45, %v1585_v44  ;;  %v1588_v47 = vpop.f32.mrb[30].mxu0 }
 0x199   : > { %v1589_v48 = vpop.f32.mrb[31].mxu0 }
 0x19a   : > { %v1590_v49 = vadd.f32 %v1589_v48, %v1588_v47 }
 0x19c   : > { %v551_v50 = vpack.c.bf16 %v1590_v49, %v1587_v46 }
 0x19e   : > { %875 = vmatmul.mubr.bf16.gmra.mrb[28].mxu1 %v551_v50 }
 0x239   : > { %v1607_v61 = vpop.f32.mrb[0].mxu1 }
 0x23a   : > { %v1608_v63 = vpop.f32.mrb[1].mxu1 }
 0x23b   : > { %v1609_v0 = vadd.f32 %v1608_v63, %v1607_v61  ;;  %v1610_v1 = vpop.f32.mrb[2].mxu1 }
 0x23c   : > { %v1611_v2 = vpop.f32.mrb[3].mxu1 }
 0x23d   : > { %v821_v3 = vadd.f32 %v1609_v0, %v2272_v62  ;;  %v1612_v4 = vadd.f32 %v1611_v2, %v1610_v1 }
 0x23f   : > { %v824_v5 = vadd.f32 %v1612_v4, %v2272_v62  ;;  %v883_v6 = vmax.f32 %v821_v3, 0.0 }
 0x241   : > { %v884_v7 = vmax.f32 %v824_v5, 0.0  ;;  %v1613_v8 = vpop.f32.mrb[4].mxu1 }
 0x242   : > { %v1614_v9 = vpop.f32.mrb[5].mxu1 }
 0x243   : > { %v1615_v10 = vadd.f32 %v1614_v9, %v1613_v8  ;;  %v1616_v11 = vpop.f32.mrb[6].mxu1  ;;  %v916_v12 = vpack.c.bf16 %v884_v7, %v883_v6 }
 0x244   : > { %v1617_v13 = vpop.f32.mrb[7].mxu1 }
 0x245   : > { %v829_v14 = vadd.f32 %v1615_v10, %v2272_v62  ;;  %v1618_v15 = vadd.f32 %v1617_v13, %v1616_v11  ;;  %1687 = vmatprep.mubr.bf16.mxu0 %v916_v12 }
 0x247   : > { %v832_v16 = vadd.f32 %v1618_v15, %v2272_v62  ;;  %v885_v17 = vmax.f32 %v829_v14, 0.0 }
 0x249   : > { %v886_v18 = vmax.f32 %v832_v16, 0.0  ;;  %v1619_v19 = vpop.f32.mrb[8].mxu1 }
 0x24a   : > { %v1620_v20 = vpop.f32.mrb[9].mxu1 }
 0x24b   : > { %v917_v21 = vpack.c.bf16 %v886_v18, %v885_v17  ;;  %v1621_v22 = vadd.f32 %v1620_v20, %v1619_v19  ;;  %v1622_v23 = vpop.f32.mrb[10].mxu1 }
 0x24c   : > { %v1623_v24 = vpop.f32.mrb[11].mxu1 }
 0x24d   : > { %v837_v25 = vadd.f32 %v1621_v22, %v2272_v62  ;;  %v1624_v26 = vadd.f32 %v1623_v24, %v1622_v23  ;;  %1688 = vmatmul.mubr.bf16.vlgmr.msra.gmra.mrb[32].mxu0 %v917_v21 }
 0x24f   : > { %v840_v27 = vadd.f32 %v1624_v26, %v2272_v62  ;;  %v887_v28 = vmax.f32 %v837_v25, 0.0  ;;  %v915_v25 = vld [vmem:[#allocation8 + $0xc4] sm:$0x1]  ;;  %v1077_v26 = vadd.s32 16, %v2267_v57 }
 0x251   : > { %v888_v29 = vmax.f32 %v840_v27, 0.0  ;;  %v1625_v30 = vpop.f32.mrb[12].mxu1  ;;  %v2293_v27 = vstv %s1374_s18 }
 0x252   : > { %v1626_v31 = vpop.f32.mrb[13].mxu1 }
 0x253   : > { %v1627_v32 = vadd.f32 %v1626_v31, %v1625_v30  ;;  %v1628_v33 = vpop.f32.mrb[14].mxu1  ;;  %v918_v34 = vpack.c.bf16 %v888_v29, %v887_v28  ;;  %v924_v28 = vunpack.c.l.bf16 %v915_v25  ;;  %v1078_v29 = vadd.s32 24, %v2267_v57 }
 0x254   : > { %v1629_v35 = vpop.f32.mrb[15].mxu1  ;;  %v1076_v30 = vadd.s32 8, %v2267_v57  ;;  %v1094_v31 = vadd.s32 %v2293_v27, %v1077_v26 }
 0x255   : > { %v845_v36 = vadd.f32 %v1627_v32, %v2272_v62  ;;  %v1630_v37 = vadd.f32 %v1629_v35, %v1628_v33  ;;  %1691 = vmatprep.mubr.bf16.mxu0 %v918_v34  ;;  %v1092_v32 = vadd.s32 %v2293_v27, %v2267_v57  ;;  %v1095_v33 = vadd.s32 %v2293_v27, %v1078_v29 }
 0x256   : > { %v1093_v34 = vadd.s32 %v2293_v27, %v1076_v30  ;;  %vm1110_vm0 = vcmp.lt.s32.totalorder %v1094_v31, 8 }
 0x257   : > { %v848_v38 = vadd.f32 %v1630_v37, %v2272_v62  ;;  %v889_v39 = vmax.f32 %v845_v36, 0.0  ;;  %vm1108_vm1 = vcmp.lt.s32.totalorder %v1092_v32, 8  ;;  %vm1111_vm2 = vcmp.lt.s32.totalorder %v1095_v33, 8 }
 0x258   : > { %vm1109_vm3 = vcmp.lt.s32.totalorder %v1093_v34, 8  ;;  %v1089_v32 = vadd.s32 112, %v2267_v57  ;;  %v1087_v33 = vadd.s32 96, %v2267_v57  ;;  %v1090_v34 = vadd.s32 120, %v2267_v57 }
 0x259   : > { %v890_v40 = vmax.f32 %v848_v38, 0.0  ;;  %v1631_v41 = vpop.f32.mrb[16].mxu1 }
 0x25a   : > { %v1632_v42 = vpop.f32.mrb[17].mxu1 }
 0x25b   : > { %v1633_v43 = vadd.f32 %v1632_v42, %v1631_v41  ;;  %v1634_v44 = vpop.f32.mrb[18].mxu1  ;;  %v919_v45 = vpack.c.bf16 %v890_v40, %v889_v39 }
 0x25c   : > { %v1635_v46 = vpop.f32.mrb[19].mxu1 }
 0x25d   : > { %v853_v47 = vadd.f32 %v1633_v43, %v2272_v62  ;;  %v1636_v48 = vadd.f32 %v1635_v46, %v1634_v44  ;;  %1692 = vmatmul.mubr.bf16.gmra.mrb[36].mxu0 %v919_v45 }
 0x25f   : > { %v856_v49 = vadd.f32 %v1636_v48, %v2272_v62  ;;  %v891_v50 = vmax.f32 %v853_v47, 0.0  ;;  %v1081_v48 = vadd.s32 48, %v2267_v57 }
 0x261   : > { %v892_v51 = vmax.f32 %v856_v49, 0.0  ;;  %v1637_v52 = vpop.f32.mrb[20].mxu1  ;;  %v1079_v49 = vadd.s32 32, %v2267_v57 }
 0x262   : > { %v1638_v53 = vpop.f32.mrb[21].mxu1 }
 0x263   : > { %v1639_v54 = vadd.f32 %v1638_v53, %v1637_v52  ;;  %v1640_v55 = vpop.f32.mrb[22].mxu1  ;;  %v920_v56 = vpack.c.bf16 %v892_v51, %v891_v50  ;;  %v1082_v50 = vadd.s32 56, %v2267_v57  ;;  %v1080_v51 = vadd.s32 40, %v2267_v57 }
 0x264   : > { %v1641_v58 = vpop.f32.mrb[23].mxu1  ;;  %v1098_v52 = vadd.s32 %v2293_v27, %v1081_v48  ;;  %v1096_v53 = vadd.s32 %v2293_v27, %v1079_v49 }
 0x265   : > { %v861_v59 = vadd.f32 %v1639_v54, %v2272_v62  ;;  %v1642_v61 = vadd.f32 %v1641_v58, %v1640_v55  ;;  %1695 = vmatprep.mubr.bf16.mxu1 %v920_v56  ;;  %v1099_v54 = vadd.s32 %v2293_v27, %v1082_v50  ;;  %v1097_v55 = vadd.s32 %v2293_v27, %v1080_v51 }
 0x266   : > { %vm1114_vm4 = vcmp.lt.s32.totalorder %v1098_v52, 8  ;;  %vm1112_vm5 = vcmp.lt.s32.totalorder %v1096_v53, 8 }
 0x267   : > { %v864_v63 = vadd.f32 %v1642_v61, %v2272_v62  ;;  %v893_v0 = vmax.f32 %v861_v59, 0.0  ;;  %vm1115_vm6 = vcmp.lt.s32.totalorder %v1099_v54, 8  ;;  %vm1113_vm7 = vcmp.lt.s32.totalorder %v1097_v55, 8 }
 0x269   : > { %v894_v1 = vmax.f32 %v864_v63, 0.0  ;;  %v1643_v2 = vpop.f32.mrb[24].mxu1 }
 0x26a   : > { %v1644_v3 = vpop.f32.mrb[25].mxu1 }
 0x26b   : > { %v921_v4 = vpack.c.bf16 %v894_v1, %v893_v0  ;;  %v1645_v5 = vadd.f32 %v1644_v3, %v1643_v2  ;;  %v1646_v6 = vpop.f32.mrb[26].mxu1 }
 0x26c   : > { %v1647_v7 = vpop.f32.mrb[27].mxu1 }
 0x26d   : > { %v869_v8 = vadd.f32 %v1645_v5, %v2272_v62  ;;  %v1648_v9 = vadd.f32 %v1647_v7, %v1646_v6  ;;  %1696 = vmatmul.mubr.bf16.vlgmr.msra.gmra.mrb[32].mxu1 %v921_v4 }
 0x26f   : > { %v872_v10 = vadd.f32 %v1648_v9, %v2272_v62  ;;  %v895_v11 = vmax.f32 %v869_v8, 0.0  ;;  %v1085_v9 = vadd.s32 80, %v2267_v57 }
 0x271   : > { %v896_v12 = vmax.f32 %v872_v10, 0.0  ;;  %v1649_v13 = vpop.f32.mrb[28].mxu1  ;;  %v1083_v10 = vadd.s32 64, %v2267_v57 }
 0x272   : > { %v1650_v14 = vpop.f32.mrb[29].mxu1 }
 0x273   : > { %v1651_v15 = vadd.f32 %v1650_v14, %v1649_v13  ;;  %v1652_v16 = vpop.f32.mrb[30].mxu1  ;;  %v922_v17 = vpack.c.bf16 %v896_v12, %v895_v11  ;;  %v1086_v11 = vadd.s32 88, %v2267_v57  ;;  %v1084_v12 = vadd.s32 72, %v2267_v57 }
 0x274   : > { %v1653_v18 = vpop.f32.mrb[31].mxu1  ;;  %v1102_v13 = vadd.s32 %v2293_v27, %v1085_v9  ;;  %v1100_v14 = vadd.s32 %v2293_v27, %v1083_v10 }
 0x275   : > { %v877_v19 = vadd.f32 %v1651_v15, %v2272_v62  ;;  %v1654_v20 = vadd.f32 %v1653_v18, %v1652_v16  ;;  %1699 = vmatprep.mubr.bf16.mxu1 %v922_v17  ;;  %v1103_v15 = vadd.s32 %v2293_v27, %v1086_v11  ;;  %v1101_v16 = vadd.s32 %v2293_v27, %v1084_v12 }
 0x276   : > { %vm1118_vm8 = vcmp.lt.s32.totalorder %v1102_v13, 8  ;;  %vm1116_vm9 = vcmp.lt.s32.totalorder %v1100_v14, 8 }
 0x277   : > { %v880_v21 = vadd.f32 %v1654_v20, %v2272_v62  ;;  %v897_v22 = vmax.f32 %v877_v19, 0.0  ;;  %v2300_v62 = vrot.slane %v924_v28, %v688_v60  ;;  %vm1119_vm10 = vcmp.lt.s32.totalorder %v1103_v15, 8 }
 0x278   : > { %vm1117_vm11 = vcmp.lt.s32.totalorder %v1101_v16, 8 }
 0x279   : > { %v898_v23 = vmax.f32 %v880_v21, 0.0 }
 0x27b   : > { %v923_v24 = vpack.c.bf16 %v898_v23, %v897_v22 }
 0x27d   : > { %1700 = vmatmul.mubr.bf16.gmra.mrb[36].mxu1 %v923_v24 }
 0x320   : > { %v1689_v35 = vpop.f32.mrb[32].mxu0 }
 0x321   : > { %v1020_v36 = vadd.f32 %v1689_v35, %v2300_v62  ;;  %v1011_v37 = vpop.f32.mrb[33].mxu0  ;;  %v1088_v35 = vadd.s32 104, %v2267_v57 }
 0x322   : > { %v1012_v38 = vadd.f32 %v1011_v37, %v2300_v62  ;;  %v1690_v39 = vpop.f32.mrb[34].mxu0  ;;  %v1104_v37 = vadd.s32 %v2293_v27, %v1087_v33 }
 0x323   : > { %v1158_v60 = vsel %vm1110_vm0, %v1020_v36, 0.0  ;;  %v1023_v40 = vadd.f32 %v1690_v39, %v2300_v62  ;;  %v1014_v41 = vpop.f32.mrb[35].mxu0  ;;  %v1106_v36 = vadd.s32 %v2293_v27, %v1089_v32  ;;  %v1105_v39 = vadd.s32 %v2293_v27, %v1088_v35 }
 0x324   : > { %v1156_v42 = vsel %vm1108_vm1, %v1012_v38, 0.0  ;;  %v1015_v43 = vadd.f32 %v1014_v41, %v2300_v62  ;;  %v1107_v38 = vadd.s32 %v2293_v27, %v1090_v34  ;;  %vm1120_vm13 = vcmp.lt.s32.totalorder %v1104_v37, 8 }
 0x325   : > { %v1159_v44 = vsel %vm1111_vm2, %v1023_v40, 0.0  ;;  %vm1122_vm12 = vcmp.lt.s32.totalorder %v1106_v36, 8  ;;  %vm1121_vm15 = vcmp.lt.s32.totalorder %v1105_v39, 8 }
 0x326   : > { %v1488_v45 = vpack.c.bf16 %v1159_v44, %v1158_v60  ;;  %v1157_v46 = vsel %vm1109_vm3, %v1015_v43, 0.0  ;;  %vm1123_vm14 = vcmp.lt.s32.totalorder %v1107_v38, 8 }
 0x327   : > { %v1483_v47 = vpack.c.bf16 %v1157_v46, %v1156_v42 }
 0x328   : > { %1520 = vst [vmem:[%s2311_s27 + $0x8] sm:$0xff] %v1488_v45  }
 0x329   : > { %1484 = vst [vmem:[%s2311_s27] sm:$0xff] %v1483_v47  }
 0x330   : > { %v1693_v56 = vpop.f32.mrb[36].mxu0 }
 0x331   : > { %v1036_v58 = vadd.f32 %v1693_v56, %v2300_v62  ;;  %v1027_v59 = vpop.f32.mrb[37].mxu0 }
 0x332   : > { %v1028_v61 = vadd.f32 %v1027_v59, %v2300_v62  ;;  %v1694_v63 = vpop.f32.mrb[38].mxu0 }
 0x333   : > { %v1162_v0 = vsel %vm1114_vm4, %v1036_v58, 0.0  ;;  %v1039_v1 = vadd.f32 %v1694_v63, %v2300_v62  ;;  %v1030_v2 = vpop.f32.mrb[39].mxu0 }
 0x334   : > { %v1160_v3 = vsel %vm1112_vm5, %v1028_v61, 0.0  ;;  %v1031_v4 = vadd.f32 %v1030_v2, %v2300_v62 }
 0x335   : > { %v1163_v5 = vsel %vm1115_vm6, %v1039_v1, 0.0 }
 0x336   : > { %v1498_v6 = vpack.c.bf16 %v1163_v5, %v1162_v0  ;;  %v1161_v7 = vsel %vm1113_vm7, %v1031_v4, 0.0 }
 0x337   : > { %v1493_v8 = vpack.c.bf16 %v1161_v7, %v1160_v3 }
 0x338   : > { %1522 = vst [vmem:[%s2311_s27 + $0x18] sm:$0xff] %v1498_v6  }
 0x339   : > { %1521 = vst [vmem:[%s2311_s27 + $0x10] sm:$0xff] %v1493_v8  }
 0x340   : > { %v1697_v17 = vpop.f32.mrb[32].mxu1 }
 0x341   : > { %v1052_v18 = vadd.f32 %v1697_v17, %v2300_v62  ;;  %v1043_v19 = vpop.f32.mrb[33].mxu1 }
 0x342   : > { %v1044_v20 = vadd.f32 %v1043_v19, %v2300_v62  ;;  %v1698_v21 = vpop.f32.mrb[34].mxu1 }
 0x343   : > { %v1166_v22 = vsel %vm1118_vm8, %v1052_v18, 0.0  ;;  %v1055_v23 = vadd.f32 %v1698_v21, %v2300_v62  ;;  %v1046_v24 = vpop.f32.mrb[35].mxu1 }
 0x344   : > { %v1164_v25 = vsel %vm1116_vm9, %v1044_v20, 0.0  ;;  %v1047_v26 = vadd.f32 %v1046_v24, %v2300_v62 }
 0x345   : > { %v1167_v28 = vsel %vm1119_vm10, %v1055_v23, 0.0 }
 0x346   : > { %v1508_v29 = vpack.c.bf16 %v1167_v28, %v1166_v22  ;;  %v1165_v30 = vsel %vm1117_vm11, %v1047_v26, 0.0 }
 0x347   : > { %v1503_v31 = vpack.c.bf16 %v1165_v30, %v1164_v25 }
 0x348   : > { %1524 = vst [vmem:[%s2311_s27 + $0x28] sm:$0xff] %v1508_v29  }
 0x349   : > { %1523 = vst [vmem:[%s2311_s27 + $0x20] sm:$0xff] %v1503_v31  }
 0x350   : > { %v1701_v60 = vpop.f32.mrb[36].mxu1 }
 0x351   : > { %v1068_v40 = vadd.f32 %v1701_v60, %v2300_v62  ;;  %v1059_v41 = vpop.f32.mrb[37].mxu1 }
 0x352   : > { %v1060_v42 = vadd.f32 %v1059_v41, %v2300_v62  ;;  %v1702_v43 = vpop.f32.mrb[38].mxu1 }
 0x353   : > { %v1170_v57 = vsel %vm1122_vm12, %v1068_v40, 0.0  ;;  %v1071_v44 = vadd.f32 %v1702_v43, %v2300_v62  ;;  %v1062_v45 = vpop.f32.mrb[39].mxu1 }
 0x354   : > { %v1168_v27 = vsel %vm1120_vm13, %v1060_v42, 0.0  ;;  %v1063_v46 = vadd.f32 %v1062_v45, %v2300_v62 }
 0x355   : > { %v1171_v47 = vsel %vm1123_vm14, %v1071_v44, 0.0 }
 0x356   : > { %v1518_v48 = vpack.c.bf16 %v1171_v47, %v1170_v57  ;;  %v1169_v49 = vsel %vm1121_vm15, %v1063_v46, 0.0 }
 0x357   : > { %v1513_v50 = vpack.c.bf16 %v1169_v49, %v1168_v27 }
 0x358   : > { %1526 = vst [vmem:[%s2311_s27 + $0x38] sm:$0xff] %v1518_v48  }
 0x359   : > { %1525 = vst [vmem:[%s2311_s27 + $0x30] sm:$0xff] %v1513_v50  }
 0x35a   : > { %1963 = shalt.err (!%p1960_p2)
}
 0x35b   : > { %s1964_s29 = scalar_lea.hbm %s2360_s25, 1024  ;;  %s1968_s20 = scalar_lea.hbm %s2411_s3, 2048 }
 0x35c   : > { %p1965_p13 = scmp.ne.s32.totalorder %s2360_s25, %s1964_s29  ;;  %p1969_p4 = scmp.lt.u32.totalorder %s2360_s25, %s2411_s3 }
 0x35d   : > { %p1970_p5 = scmp.lt.u32.totalorder %s1968_s20, %s1964_s29  ;;  %p1972_p11 = scmp.lt.u32.totalorder %s1964_s29, %s2360_s25 }
 0x35e   : > { %p1966_p6 = pnand %p1965_p13, %p2425_p0 }
 0x35f   : > { %p1971_p8 = por %p1970_p5, %p1969_p4 }
 0x360   : > { %p1967_p10 = pneg %p1966_p6 }
 0x361   : > { %p1973_p1 = por %p1972_p11, %p1971_p8 }
 0x363   : > { %p1974_p3 = pnand %p1973_p1, %p1967_p10 }
 0x365   : > { %1977 = shalt.err (!%p1974_p3)
}
 0x366   : > { %s2030_s26 = smov 64   ;;  %s2031_s27 = smov 4  }
 0x367   : > { %1729 = dma.vmem_to_hbm [thread:$0]  (%p2425_p0), %s2362_s23, 1024, %s2360_s25, %s1253_s16, %s2030_s26, %s2030_s26, %s2031_s27  }
 0x368 PF: > { %s1281_s5 = sand.u32 1, %s2008_s12   ;;  %p2426_p7 = scmp.ne.s32.totalorder %s2416_s19, 0 }
 0x369   : > { %p2427_p9 = scmp.ge.s32.totalorder %s2020_s15, 2  ;;  %s1282_s10 = scalar_lea.sflag [#allocation5], %s1281_s5 }
 0x36b   : > { %p1743_p12 = pnand %p2427_p9, %p2426_p7 }
 0x36d   : > { %2003 = dma.done.wait (!%p1743_p12), %s1282_s10, 1024  }
 0x36e   : > { %2005 = vsyncadd (!%p1743_p12), %s1282_s10, 4294966272  ;;  %p17_p2 = scmp.ge.s32.totalorder %s2162_s4, 4   ;;  %s2428_s12 = smov %s2012_s13 }
 0x36f   : > { %s2429_s13 = smov %s2016_s14  ;;  %s2430_s14 = smov %s2178_s9 }
 0x370   : > { %s2431_s15 = smov %s2162_s4  ;;  %19 = sbr.rel (!%p17_p2) target bundleno = 6 (0x6), region = 86 }
 0x377   :  { %1287 = vsyncpa [#allocation4], 1 }
 0x378   :  { %1289 = vsyncpa [#allocation4 + $0x1], 1 }
 0x379   :  { %1290 = vsyncpa [#allocation7], 1 }
 0x37a   :  { %1291 = vsyncpa [#allocation5], 1 }
 0x37b   :  { %1293 = vsyncpa [#allocation5 + $0x1], 1 }

</bundles_post_ra>
